<compile_context>
chip_gen: v7x
topology: tpu7x:2x2x1
jax: 0.10.0
libtpu: 0.0.40
codegen_flags: <defaults>
</compile_context>

<pallas_src>
import functools

import jax
import jax.numpy as jnp
import numpy as np
from jax.experimental import pallas as pl
from jax.experimental.pallas import tpu as pltpu

NEG_SLOPE = 0.01   # PyTorch LeakyReLU default
MASK_NEG = -1e30   # additive off-head bias; exp() underflows to exactly 0.0


def _lrelu(a):
    return jnp.where(a >= 0, a, NEG_SLOPE * a)


def mha_kernel(x_ref, wd_ref, bd_ref, whc_ref, bhc_ref, wqkv_ref, bqkv_ref,
               bias_ref, out_ref, *, num_heads, sample_length, seq_length):
    """Whole forward in one kernel; heads fused into wide, lane-dense matmuls."""
    H, S = num_heads, sample_length
    HS = H * S
    B = x_ref.shape[0]
    wdt = wd_ref.dtype  # bf16 weight path keeps f32 accumulation via the dots

    x = x_ref[...]                                                   # (B, L)

    # CpyAndW.downsample + LeakyReLU:        (B, L) @ (L, S) -> (B, S)
    down = _lrelu(
        jnp.dot(x.astype(wdt), wd_ref[...], preferred_element_type=jnp.float32)
        + bd_ref[...])

    # All H per-head Linears in ONE matmul:  (B, S) @ (S, H*S) -> (B, H*S)
    heads = _lrelu(
        jnp.dot(down.astype(wdt), whc_ref[...],
                preferred_element_type=jnp.float32) + bhc_ref[...])

    # Block-diagonal fused Q/K/V:            (B, H*S) @ (H*S, 3*H*S) -> (B, 3*H*S)
    # Runs directly on the lane-dense activation; no (B*H, S) relayout anywhere.
    qkv = (jnp.dot(heads.astype(wdt), wqkv_ref[...],
                   preferred_element_type=jnp.float32) + bqkv_ref[...])
    q = qkv[:, 0 * HS:1 * HS]                                        # (B, H*S)
    k = qkv[:, 1 * HS:2 * HS]
    v = qkv[:, 2 * HS:3 * HS]

    # transpose_the_sequence makes q/k/v (.., S, 1): scores are rank-1 outer
    # products within each head.  Form them head-fused as (B, H*S, H*S) and add
    # the precomputed -1e30 off-head bias; masked entries exp() to 0 so the
    # per-head softmax and context are exact.
    scale = 1.0 / float(seq_length) ** 0.5
    scores = q[:, :, None] * (k * scale)[:, None, :] + bias_ref[...]  # (B,HS,HS)

    m = jnp.max(scores, axis=-1, keepdims=True)                       # (B,HS,1)
    p = jnp.exp(scores - m)
    denom = jnp.sum(p, axis=-1)                                       # (B,HS)

    # Context: VPU multiply + lane reduce (the (S,S)@(S,1) matmul would fill
    # <=1/128 of an MXU column); normalize AFTER the reduction via EUP recip.
    ctx = jnp.sum(p * v[:, None, :], axis=-1)                         # (B,HS)
    ctx = ctx * pl.reciprocal(denom, approx=False)

    # TODO(synk): nn.Dropout(0.2) is stochastic; identity here (eval mode) —
    # training parity would need pltpu.prng_seed + pltpu.prng_random_bits.

    # Single lane-dense store: (1, B*H*S) (=128 lanes at these sizes);
    # reshaped to (B, H, S) in the wrapper.
    out_ref[...] = _lrelu(ctx).reshape(1, B * HS).astype(out_ref.dtype)


def prepare_params(params, *, num_heads, param_dtype=jnp.float32):
    """ONE-TIME repacking of the PyTorch-style parameters (hoisted out of the
    per-call path): per-head weight concat, block-diagonal Q/K/V, bias tiling,
    additive head mask, and the optional bf16 weight cast."""
    wd, bd, wh, bh, wq, bq, wk, bk, wv, bv = params
    H = num_heads
    S = wd.shape[1]
    HS = H * S

    # (H, S, S) per-head weights -> (S, H*S): all heads become one matmul.
    whc = jnp.transpose(wh, (1, 0, 2)).reshape(S, HS)
    bhc = bh.reshape(1, HS)

    def bdiag(w):  # (S, S) -> (H*S, H*S) block diagonal (one block per head)
        return jax.scipy.linalg.block_diag(*([w] * H))

    wqkv = jnp.concatenate([bdiag(wq), bdiag(wk), bdiag(wv)], axis=1)  # (HS,3HS)
    bqkv = jnp.concatenate([jnp.tile(bq, (1, H)), jnp.tile(bk, (1, H)),
                            jnp.tile(bv, (1, H))], axis=1)             # (1,3HS)

    # Additive head mask: 0 on same-head blocks, -1e30 elsewhere.
    seg = jnp.arange(HS) // S
    attn_bias = jnp.where(seg[:, None] == seg[None, :],
                          0.0, MASK_NEG).astype(jnp.float32)           # (HS,HS)

    wd_c, whc_c, wqkv_c = (w.astype(param_dtype) for w in (wd, whc, wqkv))
    return (wd_c, bd, whc_c, bhc, wqkv_c, bqkv, attn_bias)


def multi_head_attention(x, packed, *, num_heads, seq_length):
    """Per-call wrapper: no repacking here — just the pallas_call + a reshape."""
    wd, bd, whc, bhc, wqkv, bqkv, attn_bias = packed
    B, L = x.shape
    S = bd.shape[1]
    H = num_heads
    HS = H * S

    kern = functools.partial(mha_kernel, num_heads=H, sample_length=S,
                             seq_length=seq_length)

    flops = int(2 * B * L * S          # downsample
                + 2 * B * S * HS       # fused per-head linears
                + 2 * B * HS * 3 * HS  # block-diagonal q/k/v
                + 5 * B * HS * HS)     # scores + softmax + context
    cost = pl.CostEstimate(
        flops=flops,
        transcendentals=int(B * HS * HS),
        bytes_accessed=int(4 * (x.size + wd.size + bd.size + whc.size
                                + bhc.size + wqkv.size + bqkv.size
                                + attn_bias.size + B * HS)))

    vmem = pl.BlockSpec(memory_space=pltpu.MemorySpace.VMEM)
    # Everything fits VMEM comfortably at these sizes (a few KiB), so no grid.
    # If B/H/S scale: grid over batch/heads with
    # dimension_semantics=("parallel", ...) (uses both v7x TensorCores),
    # flash-style score tiling, and explicit vmem_limit_bytes (v7x: 64 MiB).
    out2d = pl.pallas_call(
        kern,
        out_shape=jax.ShapeDtypeStruct((1, B * HS), jnp.float32),
        in_specs=[vmem] * 8,
        out_specs=vmem,
        cost_estimate=cost,
    )(x, wd, bd, whc, bhc, wqkv, bqkv, attn_bias)
    return out2d.reshape(B, H, S)


def init_params(key, num_heads, seq_length, sample_length):
    """Deterministic synthetic parameters.
    Weights stored as (in_features, out_features) so the kernel does x @ W.
    Biases stored as (1, out) / (H, out) 2-D arrays for TPU-friendly layout."""
    assert sample_length == seq_length, (
        "CpyAndW per-head Linears are (seq_length, seq_length); the PyTorch "
        "module only runs when sample_length == seq_length.")
    ks = jax.random.split(key, 10)
    s = 0.1
    wd = s * jax.random.normal(ks[0], (seq_length, sample_length), jnp.float32)
    bd = s * jax.random.normal(ks[1], (1, sample_length), jnp.float32)
    wh = s * jax.random.normal(ks[2], (num_heads, sample_length, sample_length), jnp.float32)
    bh = s * jax.random.normal(ks[3], (num_heads, sample_length), jnp.float32)
    wq = s * jax.random.normal(ks[4], (sample_length, sample_length), jnp.float32)
    bq = s * jax.random.normal(ks[5], (1, sample_length), jnp.float32)
    wk = s * jax.random.normal(ks[6], (sample_length, sample_length), jnp.float32)
    bk = s * jax.random.normal(ks[7], (1, sample_length), jnp.float32)
    wv = s * jax.random.normal(ks[8], (sample_length, sample_length), jnp.float32)
    bv = s * jax.random.normal(ks[9], (1, sample_length), jnp.float32)
    return (wd, bd, wh, bh, wq, bq, wk, bk, wv, bv)


def reference_forward(x, params, *, num_heads, seq_length):
    """Pure-JAX replica of the PyTorch forward (eval mode), for validation."""
    wd, bd, wh, bh, wq, bq, wk, bk, wv, bv = params
    down = _lrelu(x @ wd + bd)                                      # (B, S)
    heads = [_lrelu(down @ wh[h] + bh[h]) for h in range(num_heads)]
    inp = jnp.stack(heads, axis=1)                                  # (B, H, S)
    q = inp @ wq + bq
    k = inp @ wk + bk
    v = inp @ wv + bv
    scores = q[..., :, None] * k[..., None, :] / np.sqrt(seq_length)
    prob = jax.nn.softmax(scores, axis=-1)
    ctx = jnp.sum(prob * v[..., None, :], axis=-1)                  # (B, H, S)
    return _lrelu(ctx)


if __name__ == "__main__":
    B = 2
    NUM_HEADS = 4
    SEQ_LEN = 16
    SAMPLE_LEN = 16   # must equal SEQ_LEN (see note above)

    key = jax.random.PRNGKey(0)
    kx, kp = jax.random.split(key)
    x = jax.random.normal(kx, (B, SEQ_LEN), jnp.float32)
    params = init_params(kp, NUM_HEADS, SEQ_LEN, SAMPLE_LEN)

    # One-time parameter repacking, hoisted out of the per-call path.
    packed = prepare_params(params, num_heads=NUM_HEADS)

    mha = jax.jit(functools.partial(multi_head_attention,
                                    num_heads=NUM_HEADS, seq_length=SEQ_LEN))
    out = jax.block_until_ready(mha(x, packed))

    ref = reference_forward(x, params, num_heads=NUM_HEADS, seq_length=SEQ_LEN)
    np.testing.assert_allclose(np.asarray(out), np.asarray(ref),
                               rtol=1e-5, atol=1e-5)
    assert out.shape == (B, NUM_HEADS, SAMPLE_LEN)
    print("KERNEL_OK")
</pallas_src>

<mosaic_0001>
module attributes {stable_mosaic.version = 11 : i64} {
  func.func @mha_kernel(%arg0: memref<2x16xf32, #tpu.memory_space<vmem>>, %arg1: memref<16x16xf32, #tpu.memory_space<vmem>>, %arg2: memref<1x16xf32, #tpu.memory_space<vmem>>, %arg3: memref<16x64xf32, #tpu.memory_space<vmem>>, %arg4: memref<1x64xf32, #tpu.memory_space<vmem>>, %arg5: memref<64x192xf32, #tpu.memory_space<vmem>>, %arg6: memref<1x192xf32, #tpu.memory_space<vmem>>, %arg7: memref<64x64xf32, #tpu.memory_space<vmem>>, %arg8: memref<1x128xf32, #tpu.memory_space<vmem>>) attributes {dimension_semantics = [], scalar_prefetch = 0 : i64, scratch_operands = 0 : i64, tpu.core_type = #tpu.core_type<tc>} {
    %c0 = arith.constant 0 : index
    %c0_0 = arith.constant 0 : index
    %0 = vector.load %arg0[%c0, %c0_0] : memref<2x16xf32, #tpu.memory_space<vmem>>, vector<2x16xf32>
    %c0_1 = arith.constant 0 : index
    %c0_2 = arith.constant 0 : index
    %1 = vector.load %arg1[%c0_1, %c0_2] : memref<16x16xf32, #tpu.memory_space<vmem>>, vector<16x16xf32>
    %cst = arith.constant dense<0.000000e+00> : vector<2x16xf32>
    %2 = tpu.matmul %0, %1, %cst {dimension_numbers = #tpu.dot_dimension_numbers<[1], [0], [0], [1], [0, 0, 1, 1], [], []>} : vector<2x16xf32>, vector<16x16xf32>, vector<2x16xf32> -> vector<2x16xf32>
    %c0_3 = arith.constant 0 : index
    %c0_4 = arith.constant 0 : index
    %3 = vector.load %arg2[%c0_3, %c0_4] : memref<1x16xf32, #tpu.memory_space<vmem>>, vector<1x16xf32>
    %4 = vector.broadcast %3 : vector<1x16xf32> to vector<2x16xf32>
    %5 = arith.addf %2, %4 : vector<2x16xf32>
    %cst_5 = arith.constant 0.000000e+00 : f32
    %6 = vector.broadcast %cst_5 : f32 to vector<2x16xf32>
    %7 = arith.cmpf oge, %5, %6 : vector<2x16xf32>
    %cst_6 = arith.constant 0.00999999977 : f32
    %8 = vector.broadcast %cst_6 : f32 to vector<2x16xf32>
    %9 = arith.mulf %8, %5 : vector<2x16xf32>
    %10 = arith.select %7, %5, %9 : vector<2x16xi1>, vector<2x16xf32>
    %c0_7 = arith.constant 0 : index
    %c0_8 = arith.constant 0 : index
    %11 = vector.load %arg3[%c0_7, %c0_8] : memref<16x64xf32, #tpu.memory_space<vmem>>, vector<16x64xf32>
    %cst_9 = arith.constant dense<0.000000e+00> : vector<2x64xf32>
    %12 = tpu.matmul %10, %11, %cst_9 {dimension_numbers = #tpu.dot_dimension_numbers<[1], [0], [0], [1], [0, 0, 1, 1], [], []>} : vector<2x16xf32>, vector<16x64xf32>, vector<2x64xf32> -> vector<2x64xf32>
    %c0_10 = arith.constant 0 : index
    %c0_11 = arith.constant 0 : index
    %13 = vector.load %arg4[%c0_10, %c0_11] : memref<1x64xf32, #tpu.memory_space<vmem>>, vector<1x64xf32>
    %14 = vector.broadcast %13 : vector<1x64xf32> to vector<2x64xf32>
    %15 = arith.addf %12, %14 : vector<2x64xf32>
    %cst_12 = arith.constant 0.000000e+00 : f32
    %16 = vector.broadcast %cst_12 : f32 to vector<2x64xf32>
    %17 = arith.cmpf oge, %15, %16 : vector<2x64xf32>
    %cst_13 = arith.constant 0.00999999977 : f32
    %18 = vector.broadcast %cst_13 : f32 to vector<2x64xf32>
    %19 = arith.mulf %18, %15 : vector<2x64xf32>
    %20 = arith.select %17, %15, %19 : vector<2x64xi1>, vector<2x64xf32>
    %c0_14 = arith.constant 0 : index
    %c0_15 = arith.constant 0 : index
    %21 = vector.load %arg5[%c0_14, %c0_15] : memref<64x192xf32, #tpu.memory_space<vmem>>, vector<64x192xf32>
    %cst_16 = arith.constant dense<0.000000e+00> : vector<2x192xf32>
    %22 = tpu.matmul %20, %21, %cst_16 {dimension_numbers = #tpu.dot_dimension_numbers<[1], [0], [0], [1], [0, 0, 1, 1], [], []>} : vector<2x64xf32>, vector<64x192xf32>, vector<2x192xf32> -> vector<2x192xf32>
    %c0_17 = arith.constant 0 : index
    %c0_18 = arith.constant 0 : index
    %23 = vector.load %arg6[%c0_17, %c0_18] : memref<1x192xf32, #tpu.memory_space<vmem>>, vector<1x192xf32>
    %24 = vector.broadcast %23 : vector<1x192xf32> to vector<2x192xf32>
    %25 = arith.addf %22, %24 : vector<2x192xf32>
    %26 = vector.extract_strided_slice %25 {offsets = [0, 0], sizes = [2, 64], strides = [1, 1]} : vector<2x192xf32> to vector<2x64xf32>
    %27 = vector.extract_strided_slice %25 {offsets = [0, 64], sizes = [2, 64], strides = [1, 1]} : vector<2x192xf32> to vector<2x64xf32>
    %28 = vector.extract_strided_slice %25 {offsets = [0, 128], sizes = [2, 64], strides = [1, 1]} : vector<2x192xf32> to vector<2x64xf32>
    %29 = vector.shape_cast %26 : vector<2x64xf32> to vector<2x64x1xf32>
    %cst_19 = arith.constant 2.500000e-01 : f32
    %30 = vector.broadcast %cst_19 : f32 to vector<2x64xf32>
    %31 = arith.mulf %27, %30 : vector<2x64xf32>
    %32 = vector.shape_cast %31 : vector<2x64xf32> to vector<2x1x64xf32>
    %33 = vector.broadcast %29 : vector<2x64x1xf32> to vector<2x64x64xf32>
    %34 = vector.broadcast %32 : vector<2x1x64xf32> to vector<2x64x64xf32>
    %35 = arith.mulf %33, %34 : vector<2x64x64xf32>
    %c0_20 = arith.constant 0 : index
    %c0_21 = arith.constant 0 : index
    %36 = vector.load %arg7[%c0_20, %c0_21] : memref<64x64xf32, #tpu.memory_space<vmem>>, vector<64x64xf32>
    %37 = vector.shape_cast %36 : vector<64x64xf32> to vector<1x64x64xf32>
    %38 = vector.broadcast %37 : vector<1x64x64xf32> to vector<2x64x64xf32>
    %39 = arith.addf %35, %38 : vector<2x64x64xf32>
    %cst_22 = arith.constant dense<0xFF800000> : vector<2x64xf32>
    %40 = vector.multi_reduction <maximumf>, %39, %cst_22 [2] : vector<2x64x64xf32> to vector<2x64xf32>
    %41 = vector.shape_cast %40 : vector<2x64xf32> to vector<2x64x1xf32>
    %42 = vector.broadcast %41 : vector<2x64x1xf32> to vector<2x64x64xf32>
    %43 = arith.subf %39, %42 : vector<2x64x64xf32>
    %44 = math.exp %43 : vector<2x64x64xf32>
    %cst_23 = arith.constant dense<0.000000e+00> : vector<2x64xf32>
    %45 = vector.multi_reduction <add>, %44, %cst_23 [2] : vector<2x64x64xf32> to vector<2x64xf32>
    %46 = vector.shape_cast %28 : vector<2x64xf32> to vector<2x1x64xf32>
    %47 = vector.broadcast %46 : vector<2x1x64xf32> to vector<2x64x64xf32>
    %48 = arith.mulf %44, %47 : vector<2x64x64xf32>
    %cst_24 = arith.constant dense<0.000000e+00> : vector<2x64xf32>
    %49 = vector.multi_reduction <add>, %48, %cst_24 [2] : vector<2x64x64xf32> to vector<2x64xf32>
    %50 = tpu.reciprocal %45 : vector<2x64xf32> -> vector<2x64xf32>
    %51 = arith.mulf %49, %50 : vector<2x64xf32>
    %cst_25 = arith.constant 0.000000e+00 : f32
    %52 = vector.broadcast %cst_25 : f32 to vector<2x64xf32>
    %53 = arith.cmpf oge, %51, %52 : vector<2x64xf32>
    %cst_26 = arith.constant 0.00999999977 : f32
    %54 = vector.broadcast %cst_26 : f32 to vector<2x64xf32>
    %55 = arith.mulf %54, %51 : vector<2x64xf32>
    %56 = arith.select %53, %51, %55 : vector<2x64xi1>, vector<2x64xf32>
    %57 = vector.shape_cast %56 : vector<2x64xf32> to vector<1x128xf32>
    %c0_27 = arith.constant 0 : index
    %c0_28 = arith.constant 0 : index
    %58 = vector.load %arg8[%c0_27, %c0_28] : memref<1x128xf32, #tpu.memory_space<vmem>>, vector<1x128xf32>
    tpu.vector_store %arg8[%c0_27, %c0_28], %57 {strides = array<i32>} : memref<1x128xf32, #tpu.memory_space<vmem>>, vector<1x128xf32>,
    return
  }
}

</mosaic_0001>

<bundles_post_ra>
// kernel: multi_head_attention.1
= control target key start
LH: loop header
LB: loop body
LE: loop exit
PB: predicated region body
PF: predicated region fallthrough
CT: control target
= control target key end

     0   :  { %13 = vsyncpa [#allocation3], 0  ;;  %s1859_s0 = inlined_call_operand.hbm [shape: f32[2,16], index: 0, kind: input, shape index: {}]   ;;  %s1860_s1 = inlined_call_operand.hbm [shape: f32[16,16], index: 1, kind: input, shape index: {}]   ;;  %s1861_s2 = inlined_call_operand.vmem [shape: f32[1,16], index: 2, kind: input, shape index: {}]   ;;  %s1862_s3 = inlined_call_operand.hbm [shape: f32[16,64], index: 3, kind: input, shape index: {}]   ;;  %s1863_s4 = inlined_call_operand.vmem [shape: f32[1,64], index: 4, kind: input, shape index: {}]   ;;  %s1864_s5 = inlined_call_operand.hbm [shape: f32[64,192], index: 5, kind: input, shape index: {}]   ;;  %s1865_s6 = inlined_call_operand.vmem [shape: f32[1,192], index: 6, kind: input, shape index: {}]   ;;  %s1866_s7 = inlined_call_operand.hbm [shape: f32[64,64], index: 7, kind: input, shape index: {}]   ;;  %s1867_s8 = inlined_call_operand.vmem [shape: f32[1,128], index: 8, kind: output, shape index: {}]  }
   0x1   :  { %14 = vsyncpa [#allocation5], 0 }
   0x2   :  { %15 = vsyncpa [#allocation8], 0  ;;  %s1377_s27 = smov [#allocation4]   ;;  %s1261_s9 = scalar_lea.hbm %s1860_s1, 256 }
   0x3   :  { %s31_s28 = sshll.u32 %s1377_s27, 4  ;;  %p1262_p0 = scmp.ne.s32.totalorder %s1860_s1, %s1261_s9  ;;  %s32_s28 = int_to_ptr.vmem [resolvable:$true] %s31_s28 }
   0x4   :  { %p1265_p1 = scmp.lt.u32.totalorder %s1261_s9, %s1860_s1 }
   0x6   :  { %p1267_p2 = pnand %p1265_p1, %p1262_p0 }
   0x8   :  { %1270 = shalt.err (!%p1267_p2)
}
   0x9   :  { %s1271_s14 = scalar_lea.vmem %s32_s28, 256  ;;  %p1276_p4 = scmp.lt.s32.totalorder %s32_s28, %s32_s28 }
   0xa   :  { %p1272_p3 = scmp.ne.s32.totalorder %s32_s28, %s1271_s14  ;;  %p1277_p5 = scmp.lt.s32.totalorder %s1271_s14, %s1271_s14 }
   0xc   :  { %p1278_p6 = por %p1277_p5, %p1276_p4 }
   0xe   :  { %p1279_p7 = pnand %p1278_p6, %p1272_p3 }
  0x10   :  { %1282 = shalt.err (!%p1279_p7)
}
  0x11   :  { %s1378_s15 = smov 128   ;;  %s1379_s16 = smov 8  }
  0x12   :  { %37 = dma.hbm_to_vmem [thread:$0]  %s1860_s1, 256, %s32_s28, [#allocation5], %s1378_s15, %s1378_s15, %s1379_s16  }
  0x13   :  { %s1380_s19 = smov [#allocation7]   ;;  %s1283_s23 = scalar_lea.hbm %s1864_s5, 2048 }
  0x14   :  { %s59_s20 = sshll.u32 %s1380_s19, 4  ;;  %p1284_p8 = scmp.ne.s32.totalorder %s1864_s5, %s1283_s23  ;;  %s60_s20 = int_to_ptr.vmem [resolvable:$true] %s59_s20 }
  0x15   :  { %p1287_p9 = scmp.lt.u32.totalorder %s1283_s23, %s1864_s5 }
  0x17   :  { %p1289_p10 = pnand %p1287_p9, %p1284_p8 }
  0x19   :  { %1292 = shalt.err (!%p1289_p10)
}
  0x1a   :  { %s1293_s29 = scalar_lea.vmem %s60_s20, 2048  ;;  %p1298_p12 = scmp.lt.s32.totalorder %s60_s20, %s60_s20 }
  0x1b   :  { %p1294_p11 = scmp.ne.s32.totalorder %s60_s20, %s1293_s29  ;;  %p1299_p13 = scmp.lt.s32.totalorder %s1293_s29, %s1293_s29 }
  0x1d   :  { %p1300_p0 = por %p1299_p13, %p1298_p12 }
  0x1f   :  { %p1301_p1 = pnand %p1300_p0, %p1294_p11 }
  0x21   :  { %1304 = shalt.err (!%p1301_p1)
}
  0x22   :  { %s1381_s1 = smov 256   ;;  %s1382_s28 = smov 16  }
  0x23   :  { %65 = dma.hbm_to_vmem [thread:$0]  %s1864_s5, 2048, %s60_s20, [#allocation8], %s1381_s1, %s1381_s1, %s1382_s28  }
  0x24   :  { %s1383_s10 = smov [#allocation2]   ;;  %s1384_s12 = smov [#allocation6]  }
  0x25   :  { %s22_s11 = sshll.u32 %s1383_s10, 4  ;;  %s45_s13 = sshll.u32 %s1384_s12, 4  ;;  %s23_s11 = int_to_ptr.vmem [resolvable:$true] %s22_s11  ;;  %s1463_s13 = int_to_ptr.vmem [resolvable:$true] %s45_s13 }
  0x26   :  { %s1305_s18 = scalar_lea.hbm %s1859_s0, 32 }
  0x27   :  { %p1306_p2 = scmp.ne.s32.totalorder %s1859_s0, %s1305_s18  ;;  %p1309_p3 = scmp.lt.u32.totalorder %s1305_s18, %s1859_s0 }
  0x29   :  { %p1311_p4 = pnand %p1309_p3, %p1306_p2 }
  0x2b   :  { %1314 = shalt.err (!%p1311_p4)
}
  0x2c   :  { %s1315_s5 = scalar_lea.vmem %s23_s11, 32  ;;  %p1320_p6 = scmp.lt.s32.totalorder %s23_s11, %s23_s11 }
  0x2d   :  { %p1316_p5 = scmp.ne.s32.totalorder %s23_s11, %s1315_s5  ;;  %p1321_p7 = scmp.lt.s32.totalorder %s1315_s5, %s1315_s5 }
  0x2f   :  { %p1322_p8 = por %p1321_p7, %p1320_p6 }
  0x31   :  { %p1323_p9 = pnand %p1322_p8, %p1316_p5 }
  0x33   :  { %1326 = shalt.err (!%p1323_p9)
}
  0x34   :  { %25 = dma.hbm_to_vmem [thread:$0]  %s1859_s0, 32, %s23_s11, [#allocation3]  }
  0x35   :  { %s1327_s27 = scalar_lea.hbm %s1862_s3, 256 }
  0x36   :  { %p1328_p10 = scmp.ne.s32.totalorder %s1862_s3, %s1327_s27  ;;  %p1331_p11 = scmp.lt.u32.totalorder %s1327_s27, %s1862_s3 }
  0x38   :  { %p1333_p12 = pnand %p1331_p11, %p1328_p10 }
  0x3a   :  { %1336 = shalt.err (!%p1333_p12)
}
  0x3b   :  { %s1337_s9 = scalar_lea.vmem %s1463_s13, 256  ;;  %p1342_p0 = scmp.lt.s32.totalorder %s1463_s13, %s1463_s13 }
  0x3c   :  { %p1338_p13 = scmp.ne.s32.totalorder %s1463_s13, %s1337_s9  ;;  %p1343_p1 = scmp.lt.s32.totalorder %s1337_s9, %s1337_s9 }
  0x3e   :  { %p1344_p2 = por %p1343_p1, %p1342_p0 }
  0x40   :  { %p1345_p3 = pnand %p1344_p2, %p1338_p13 }
  0x42   :  { %1348 = shalt.err (!%p1345_p3)
}
  0x43   :  { %51 = dma.hbm_to_vmem [thread:$0]  %s1862_s3, 256, %s1463_s13, [#allocation5], %s1378_s15, %s1378_s15, %s1379_s16  }
  0x44   :  { %s1385_s11 = smov [#allocation9]   ;;  %s1349_s18 = scalar_lea.hbm %s1866_s7, 1024 }
  0x45   :  { %s73_s12 = sshll.u32 %s1385_s11, 4  ;;  %p1350_p4 = scmp.ne.s32.totalorder %s1866_s7, %s1349_s18  ;;  %s74_s12 = int_to_ptr.vmem [resolvable:$true] %s73_s12 }
  0x46   :  { %p1353_p5 = scmp.lt.u32.totalorder %s1349_s18, %s1866_s7 }
  0x48   :  { %p1355_p6 = pnand %p1353_p5, %p1350_p4 }
  0x4a   :  { %1358 = shalt.err (!%p1355_p6)
}
  0x4b   :  { %s1359_s5 = scalar_lea.vmem %s74_s12, 1024  ;;  %p1364_p8 = scmp.lt.s32.totalorder %s74_s12, %s74_s12 }
  0x4c   :  { %p1360_p7 = scmp.ne.s32.totalorder %s74_s12, %s1359_s5  ;;  %p1365_p9 = scmp.lt.s32.totalorder %s1359_s5, %s1359_s5 }
  0x4e   :  { %p1366_p10 = por %p1365_p9, %p1364_p8 }
  0x50   :  { %p1367_p11 = pnand %p1366_p10, %p1360_p7 }
  0x52   :  { %1370 = shalt.err (!%p1367_p11)
}
  0x53   :  { %79 = dma.hbm_to_vmem [thread:$0]  %s1866_s7, 1024, %s74_s12, [#allocation8], %s1378_s15, %s1378_s15, %s1379_s16  }
  0x54   :  { %1371 = dma.done.wait [#allocation3], 32  }
  0x55   :  { %1372 = vsyncadd [#allocation3], 4294967264 }
  0x56   :  { %1373 = dma.done.wait [#allocation5], 512  }
  0x57   :  { %1374 = vsyncadd [#allocation5], 4294966784 }
  0x58   :  { %1375 = dma.done.wait [#allocation8], 3072  }
  0x59   :  { %1376 = vsyncadd [#allocation8], 4294964224  ;;  %v1386_v0 = vmov 0.0|0.0   ;;  %vm1387_vm0 = vmmov 0   ;;  %v1388_v1 = vmov 0.0   ;;  %v96_v2 = vld [vmem:[#allocation4] sm:$0xff]  ;;  %v285_v53 = vlaneseq }
  0x5a   :  { %1161 = vmatprep.subr.bf16.mxu1 %v1386_v0  ;;  %1151 = vmatprep.mubr.msk.f32.mxu1 %vm1387_vm0, %v1388_v1  ;;  %v97_v3 = vld [vmem:[#allocation4 + $0x8] sm:$0xff]  ;;  %v95_v5 = vld [vmem:[#allocation2] sm:$0x3]  ;;  %vm105_vm1 = vcmask 130048   ;;  %v182_v6 = vld [vmem:[#allocation6] sm:$0xff]  ;;  %s1389_s16 = smov 64  }
  0x5b   :  { %363 = vmatprep.mubr.f32.mxu0 %v1388_v1  ;;  %v1162_v4 = vpack.c.bf16 %v97_v3, %v96_v2  ;;  %v183_v7 = vld [vmem:[#allocation6 + $0x8] sm:$0xff]  ;;  %v268_v9 = vld [vmem:[#allocation7 + $0x8] sm:$0xff]  ;;  %v267_v11 = vld [vmem:[#allocation7] sm:$0xff]  ;;  %vm295_vm4 = vcmask 523264   ;;  %v1530_v54 = vshrl.u32 %v285_v53, 7  ;;  %vm546_vm5 = vcmask 1048064  }
  0x5c   :  { %v1165_v8 = vpack.c.bf16 %v183_v7, %v182_v6  ;;  %v270_v10 = vld [vmem:[#allocation7 + $0x18] sm:$0xff]  ;;  %v269_v13 = vld [vmem:[#allocation7 + $0x10] sm:$0xff]  ;;  %v272_v14 = vld [vmem:[#allocation7 + $0x28] sm:$0xff]  ;;  %v1390_v56 = vmov 1966171168   ;;  %vm1027_vm6 = vcmask 130112  }
  0x5d   :  { %1163 = vmatpush3.bf16.msra.mxu1 %v1162_v4  ;;  %v1167_v12 = vpack.c.bf16 %v270_v10, %v268_v9  ;;  %v274_v15 = vld [vmem:[#allocation7 + $0x38] sm:$0xff]  ;;  %v1169_v16 = vpack.c.bf16 %v269_v13, %v267_v11  ;;  %v271_v18 = vld [vmem:[#allocation7 + $0x20] sm:$0xff]  ;;  %v273_v19 = vld [vmem:[#allocation7 + $0x30] sm:$0xff]  ;;  %v1533_v55 = vsub.s32 0, %v1530_v54  ;;  %v443_v57 = vunpack.c.l.s4 %v1390_v56 }
  0x5e   :  { %1164 = vmatprep.subr.bf16.mxu1 %v1386_v0  ;;  %v1171_v17 = vpack.c.bf16 %v274_v15, %v272_v14  ;;  %v276_v20 = vld [vmem:[#allocation7 + $0x48] sm:$0xff]  ;;  %v278_v21 = vld [vmem:[#allocation7 + $0x58] sm:$0xff]  ;;  %v1173_v22 = vpack.c.bf16 %v273_v19, %v271_v18  ;;  %v275_v24 = vld [vmem:[#allocation7 + $0x40] sm:$0xff]  ;;  %v291_v3 = vsub.s32 1, %v1530_v54  ;;  %vm1034_vm7 = vcmask 195712  }
  0x5f   :  { %1168 = vmatprep.subr.bf16.mxu0 %v1167_v12  ;;  %v1175_v23 = vpack.c.bf16 %v278_v21, %v276_v20  ;;  %v277_v25 = vld [vmem:[#allocation7 + $0x50] sm:$0xff]  ;;  %v1136_v27 = vld [vmem:[%s1861_s2] ss:$0 sm:$0xff]  ;;  %v280_v33 = vld [vmem:[#allocation7 + $0x68] sm:$0xff]  ;;  %v444_v60 = vunpack.c.0.s8 %v443_v57  ;;  %vm1041_vm8 = vcmask 261312   ;;  %vm1048_vm10 = vcmask 326912  }
  0x60   :  { %1152 = vmatmul.mubr.msk.f32.vlgmr.msra.gmra.mrb[0].mxu1 %vm105_vm1, %v95_v5  ;;  %1170 = vmatpush1.bf16.msra.mxu0 %v1169_v16  ;;  %v1177_v26 = vpack.c.bf16 %v277_v25, %v275_v24  ;;  %v282_v34 = vld [vmem:[#allocation7 + $0x78] sm:$0xff]  ;;  %v279_v36 = vld [vmem:[#allocation7 + $0x60] sm:$0xff]  ;;  %v281_v37 = vld [vmem:[#allocation7 + $0x70] sm:$0xff]  ;;  %vm1055_vm14 = vcmask 392512   ;;  %vm1062_vm15 = vcmask 458112  }
  0x61   :  { %1158 = vmatprep.mubr.msk.f32.mxu1 %vm1387_vm0, %v1388_v1  ;;  %1166 = vmatpush3.bf16.msra.mxu1 %v1165_v8  ;;  %v1179_v35 = vpack.c.bf16 %v282_v34, %v280_v33  ;;  %v1181_v38 = vpack.c.bf16 %v281_v37, %v279_v36  ;;  %v491_v39 = vld [vmem:[#allocation9 + $0x8] sm:$0xff]  ;;  %v492_v40 = vld [vmem:[#allocation9 + $0x10] sm:$0xff]  ;;  %v493_v41 = vld [vmem:[#allocation9 + $0x18] sm:$0xff]  ;;  %v447_v63 = vsub.s32 %v444_v60, %v1530_v54 }
  0x62   :  { %1172 = vmatprep.subr.bf16.mxu0 %v1171_v17  ;;  %508 = vrot.lane.b32.xlu1 %v491_v39, %s1389_s16  ;;  %v494_v42 = vld [vmem:[#allocation9 + $0x20] sm:$0xff]  ;;  %v495_v43 = vld [vmem:[#allocation9 + $0x28] sm:$0xff]  ;;  %v496_v44 = vld [vmem:[#allocation9 + $0x30] sm:$0xff] }
  0x63   :  { %v1138_v45 = vld [vmem:[%s1863_s4] ss:$0 sm:$0xff]  ;;  %v490_v52 = vld [vmem:[#allocation9] sm:$0xff] }
  0x64   :  { %1174 = vmatpush1.bf16.msra.mxu0 %v1173_v22  ;;  %v497_v51 = vld [vmem:[#allocation9 + $0x38] sm:$0xff]  ;;  %506 = vrot.lane.b32.xlu0 %v490_v52, %s1389_s16 }
  0x65   :  { %1176 = vmatprep.subr.bf16.mxu0 %v1175_v23  ;;  %v283_v58 = vld [vmem:[%s1865_s6] sm:$0x3] }
  0x66   :  { %510 = vrot.lane.b32.xlu1 %v492_v40, %s1389_s16  ;;  %v288_v59 = vrot.slane %v283_v58, %v1533_v55  ;;  %v292_v7 = vrot.slane %v283_v58, %v291_v3 }
  0x68   :  { %1178 = vmatpush1.bf16.msra.mxu0 %v1177_v26 }
  0x69   :  { %1180 = vmatprep.subr.bf16.mxu0 %v1179_v35 }
  0x6a   :  { %512 = vrot.lane.b32.xlu1 %v493_v41, %s1389_s16 }
  0x6c   :  { %1182 = vmatpush1.bf16.msra.mxu0 %v1181_v38 }
  0x6e   :  { %514 = vrot.lane.b32.xlu1 %v494_v42, %s1389_s16 }
  0x72   :  { %516 = vrot.lane.b32.xlu1 %v495_v43, %s1389_s16 }
  0x76   :  { %518 = vrot.lane.b32.xlu1 %v496_v44, %s1389_s16 }
  0x7a   :  { %520 = vrot.lane.b32.xlu1 %v497_v51, %s1389_s16 }
  0xd4   :  { %v509_v17 = vpop.permute.xlu1 %508 }
  0xd6   :  { %v507_v24 = vpop.permute.xlu0 %506 }
  0xd8   :  { %v1548_v18 = vpop.permute.xlu1 %510 }
  0xdc   :  { %v513_v19 = vpop.permute.xlu1 %512 }
  0xe0   :  { %v1550_v20 = vpop.permute.xlu1 %514 }
  0xe4   :  { %v1552_v21 = vpop.permute.xlu1 %516 }
  0xe8   :  { %v1554_v22 = vpop.permute.xlu1 %518 }
  0xec   :  { %v1556_v23 = vpop.permute.xlu1 %520 }
 0x133   :  { %v175_v28 = vpop.f32.mrb[0].mxu1 }
 0x134   :  { %v176_v29 = vadd.f32 %v1136_v27, %v175_v28  ;;  %v1153_v30 = vpop.f32.mrb[1].mxu1 }
 0x136   :  { %vm179_vm2 = vcmp.ge.f32.partialorder %v176_v29, 0.0  ;;  %v180_v31 = vmul.f32 0.01, %v176_v29 }
 0x138   :  { %v181_v32 = vsel %vm179_vm2, %v176_v29, %v180_v31  ;;  %vm1069_vm2 = vcmask 523712  }
 0x139   :  { %1159 = vmatmul.mubr.msk.f32.vlgmr.msra.gmra.mrb[2].mxu1 %vm105_vm1, %v181_v32 }
 0x20c   :  { %v260_v46 = vpop.f32.mrb[2].mxu1 }
 0x20d   :  { %v261_v47 = vadd.f32 %v1138_v45, %v260_v46  ;;  %v1160_v48 = vpop.f32.mrb[3].mxu1 }
 0x20f   :  { %vm264_vm3 = vcmp.ge.f32.partialorder %v261_v47, 0.0  ;;  %v265_v49 = vmul.f32 0.01, %v261_v47 }
 0x211   :  { %v266_v50 = vsel %vm264_vm3, %v261_v47, %v265_v49  ;;  %vm1076_vm3 = vcmask 589312  }
 0x212   :  { %1140 = vmatmul.mubr.msk.f32.vlgmr.msra.gmra.mrb[0].mxu0 %vm295_vm4, %v266_v50 }
 0x2e5   :  { %v365_v61 = vpop.f32.mrb[0].mxu0 }
 0x2e6   :  { %v366_v62 = vadd.f32 %v365_v61, %v288_v59  ;;  %v367_v0 = vpop.f32.mrb[1].mxu0 }
 0x2e7   :  { %v368_v9 = vadd.f32 %v367_v0, %v292_v7 }
 0x2e8   :  { %v373_v1 = vrot.slane %v366_v62, %v1533_v55  ;;  %v440_v2 = vmul.f32 0.25, %v366_v62  ;;  %v408_v10 = vrot.slane %v366_v62, %v291_v3 }
 0x2e9   :  { %v762_v11 = vrot.slane %v368_v9, %v447_v63 }
 0x2ea   :  { %v448_v4 = vrot.slane %v440_v2, %v447_v63  ;;  %383 = vbcast.lane.b32.xlu1 %v373_v1, 272  ;;  %375 = vbcast.lane.b32.xlu0 %v373_v1, 256 }
 0x2eb   :  { %v770_v12 = vrot.slane %v762_v11, %v447_v63  ;;  %v763_v14 = vcombine.high %v762_v11, %v762_v11 }
 0x2ec   :  { %v449_v5 = vcombine.high %v448_v4, %v448_v4  ;;  %v456_v6 = vrot.slane %v448_v4, %v447_v63 }
 0x2ed   :  { %v781_v13 = vrot.slane %v770_v12, %v1533_v55  ;;  %v777_v15 = vrot.slane %v763_v14, %v447_v63 }
 0x2ee   :  { %v1542_v8 = vrot.slane %v449_v5, %v447_v63  ;;  %387 = vbcast.lane.b32.xlu1 %v373_v1, 280  ;;  %379 = vbcast.lane.b32.xlu0 %v373_v1, 264  ;;  %v467_v25 = vrot.slane %v456_v6, %v1533_v55 }
 0x2ef   :  { %v785_v16 = vrot.slane %v777_v15, %v1533_v55 }
 0x2f0   :  { %v471_v60 = vrot.slane %v1542_v8, %v1533_v55 }
 0x2f2   :  { %422 = vbcast.lane.b32.xlu1 %v408_v10, 280  ;;  %391 = vbcast.lane.b32.xlu0 %v373_v1, 288 }
 0x2f6   :  { %430 = vbcast.lane.b32.xlu1 %v408_v10, 296  ;;  %395 = vbcast.lane.b32.xlu0 %v373_v1, 296 }
 0x2fa   :  { %438 = vbcast.lane.b32.xlu1 %v408_v10, 312  ;;  %399 = vbcast.lane.b32.xlu0 %v373_v1, 304 }
 0x2fe   :  { %786 = vrot.lane.b32.xlu1 %v781_v13, %s1389_s16  ;;  %403 = vbcast.lane.b32.xlu0 %v373_v1, 312 }
 0x302   :  { %410 = vbcast.lane.b32.xlu0 %v408_v10, 256 }
 0x306   :  { %414 = vbcast.lane.b32.xlu0 %v408_v10, 264 }
 0x30a   :  { %418 = vbcast.lane.b32.xlu0 %v408_v10, 272 }
 0x30e   :  { %426 = vbcast.lane.b32.xlu0 %v408_v10, 288 }
 0x312   :  { %434 = vbcast.lane.b32.xlu0 %v408_v10, 304 }
 0x316   :  { %788 = vrot.lane.b32.xlu0 %v785_v16, %s1389_s16 }
 0x35c   :  { %v384_v26 = vpop.permute.xlu1 %383  ;;  %v376_v27 = vpop.permute.xlu0 %375 }
 0x35d   :  { %v476_v28 = vmul.f32 %v467_v25, %v384_v26  ;;  %v474_v29 = vmul.f32 %v467_v25, %v376_v27 }
 0x35f   :  { %v1559_v30 = vadd.f32 %v507_v24, %v474_v29  ;;  %v1564_v36 = vadd.f32 %v1548_v18, %v476_v28 }
 0x360   :  { %v388_v31 = vpop.permute.xlu1 %387  ;;  %v380_v32 = vpop.permute.xlu0 %379 }
 0x361   :  { %v477_v33 = vmul.f32 %v467_v25, %v388_v31  ;;  %v475_v34 = vmul.f32 %v467_v25, %v380_v32  ;;  %v547_v35 = vsel %vm546_vm5, %v1559_v30, -inf  ;;  %v553_v40 = vsel %vm546_vm5, %v1564_v36, -inf }
 0x362   :  { %548 = vmax.xlane.f32.xlu0 %v547_v35 }
 0x363   :  { %v1566_v37 = vadd.f32 %v509_v17, %v475_v34  ;;  %v1572_v42 = vadd.f32 %v513_v19, %v477_v33 }
 0x364   :  { %v392_v38 = vpop.permute.xlu0 %391  ;;  %v423_v59 = vpop.permute.xlu1 %422 }
 0x365   :  { %v478_v39 = vmul.f32 %v467_v25, %v392_v38  ;;  %v550_v41 = vsel %vm546_vm5, %v1566_v37, -inf  ;;  %v556_v46 = vsel %vm546_vm5, %v1572_v42, -inf  ;;  %v485_v2 = vmul.f32 %v471_v60, %v423_v59 }
 0x366   :  { %554 = vmax.xlane.f32.xlu0 %v553_v40  ;;  %551 = vmax.xlane.f32.xlu1 %v550_v41 }
 0x367   :  { %v1575_v43 = vadd.f32 %v1550_v20, %v478_v39  ;;  %v1604_v8 = vadd.f32 %v513_v19, %v485_v2 }
 0x368   :  { %v396_v44 = vpop.permute.xlu0 %395  ;;  %v431_v3 = vpop.permute.xlu1 %430 }
 0x369   :  { %v479_v45 = vmul.f32 %v467_v25, %v396_v44  ;;  %v559_v47 = vsel %vm546_vm5, %v1575_v43, -inf  ;;  %v487_v9 = vmul.f32 %v471_v60, %v431_v3  ;;  %v580_v15 = vsel %vm546_vm5, %v1604_v8, -inf }
 0x36a   :  { %557 = vmax.xlane.f32.xlu0 %v556_v46  ;;  %560 = vmax.xlane.f32.xlu1 %v559_v47 }
 0x36b   :  { %v1582_v48 = vadd.f32 %v1552_v21, %v479_v45 }
 0x36c   :  { %v400_v49 = vpop.permute.xlu0 %399  ;;  %v439_v12 = vpop.permute.xlu1 %438 }
 0x36d   :  { %v480_v50 = vmul.f32 %v467_v25, %v400_v49  ;;  %v562_v51 = vsel %vm546_vm5, %v1582_v48, -inf  ;;  %v489_v16 = vmul.f32 %v471_v60, %v439_v12 }
 0x36e   :  { %563 = vmax.xlane.f32.xlu0 %v562_v51 }
 0x36f   :  { %v1587_v52 = vadd.f32 %v1554_v22, %v480_v50  ;;  %v1626_v29 = vadd.f32 %v1556_v23, %v489_v16 }
 0x370   :  { %v404_v56 = vpop.permute.xlu0 %403  ;;  %v1637_v33 = vpop.permute.xlu1 %786 }
 0x371   :  { %v481_v57 = vmul.f32 %v467_v25, %v404_v56  ;;  %v565_v58 = vsel %vm546_vm5, %v1587_v52, -inf }
 0x372   :  { %566 = vmax.xlane.f32.xlu1 %v565_v58 }
 0x373   :  { %v1594_v61 = vadd.f32 %v1556_v23, %v481_v57 }
 0x374   :  { %v411_v62 = vpop.permute.xlu0 %410 }
 0x375   :  { %v482_v63 = vmul.f32 %v471_v60, %v411_v62  ;;  %v568_v0 = vsel %vm546_vm5, %v1594_v61, -inf }
 0x376   :  { %569 = vmax.xlane.f32.xlu0 %v568_v0 }
 0x377   :  { %v1598_v1 = vadd.f32 %v507_v24, %v482_v63  ;;  %v1616_v24 = vadd.f32 %v1552_v21, %v487_v9 }
 0x378   :  { %v415_v4 = vpop.permute.xlu0 %414 }
 0x379   :  { %v483_v5 = vmul.f32 %v471_v60, %v415_v4  ;;  %v571_v6 = vsel %vm546_vm5, %v1598_v1, -inf  ;;  %v586_v27 = vsel %vm546_vm5, %v1616_v24, -inf }
 0x37a   :  { %572 = vmax.xlane.f32.xlu1 %v571_v6 }
 0x37b   :  { %v1602_v55 = vadd.f32 %v509_v17, %v483_v5 }
 0x37c   :  { %v419_v7 = vpop.permute.xlu0 %418 }
 0x37d   :  { %v484_v10 = vmul.f32 %v471_v60, %v419_v7  ;;  %v574_v11 = vsel %vm546_vm5, %v1602_v55, -inf }
 0x37e   :  { %575 = vmax.xlane.f32.xlu0 %v574_v11 }
 0x37f   :  { %v1609_v13 = vadd.f32 %v1548_v18, %v484_v10 }
 0x380   :  { %v427_v14 = vpop.permute.xlu0 %426 }
 0x381   :  { %v486_v17 = vmul.f32 %v471_v60, %v427_v14  ;;  %v577_v19 = vsel %vm546_vm5, %v1609_v13, -inf }
 0x382   :  { %581 = vmax.xlane.f32.xlu0 %v580_v15  ;;  %578 = vmax.xlane.f32.xlu1 %v577_v19 }
 0x383   :  { %v1619_v25 = vadd.f32 %v1550_v20, %v486_v17  ;;  %v592_v20 = vsel %vm546_vm5, %v1626_v29, -inf }
 0x384   :  { %v435_v26 = vpop.permute.xlu0 %434 }
 0x385   :  { %v488_v18 = vmul.f32 %v471_v60, %v435_v26  ;;  %v583_v28 = vsel %vm546_vm5, %v1619_v25, -inf }
 0x386   :  { %587 = vmax.xlane.f32.xlu0 %v586_v27  ;;  %584 = vmax.xlane.f32.xlu1 %v583_v28 }
 0x387   :  { %v1629_v21 = vadd.f32 %v1554_v22, %v488_v18 }
 0x388   :  { %v1635_v32 = vpop.permute.xlu0 %788 }
 0x389   :  { %v589_v31 = vsel %vm546_vm5, %v1629_v21, -inf }
 0x38a   :  { %593 = vmax.xlane.f32.xlu0 %v592_v20  ;;  %590 = vmax.xlane.f32.xlu1 %v589_v31 }
 0x3ef   :  { %v549_v34 = vpop.xlane.xlu0 %548 }
 0x3f0   :  { %v595_v23 = vsub.f32 %v1559_v30, %v549_v34 }
 0x3f2   :  { %v611_v35 = vmul.f32 1.442695, %v595_v23 }
 0x3f3   :  { %v552_v38 = vpop.xlane.xlu1 %551  ;;  %v555_v39 = vpop.xlane.xlu0 %554 }
 0x3f4   :  { %1197 = vpow2.f32 %v611_v35  ;;  %v596_v22 = vsub.f32 %v1566_v37, %v552_v38  ;;  %v597_v40 = vsub.f32 %v1564_v36, %v555_v39 }
 0x3f6   :  { %v613_v41 = vmul.f32 1.442695, %v596_v22  ;;  %v615_v44 = vmul.f32 1.442695, %v597_v40 }
 0x3f7   :  { %v561_v45 = vpop.xlane.xlu1 %560  ;;  %v558_v46 = vpop.xlane.xlu0 %557 }
 0x3f8   :  { %1199 = vpow2.f32 %v613_v41  ;;  %v599_v47 = vsub.f32 %v1575_v43, %v561_v45  ;;  %v598_v49 = vsub.f32 %v1572_v42, %v558_v46 }
 0x3f9   :  { %1201 = vpow2.f32 %v615_v44 }
 0x3fa   :  { %v619_v50 = vmul.f32 1.442695, %v599_v47  ;;  %v617_v30 = vmul.f32 1.442695, %v598_v49 }
 0x3fb   :  { %v564_v51 = vpop.xlane.xlu0 %563 }
 0x3fc   :  { %1203 = vpow2.f32 %v619_v50  ;;  %v600_v56 = vsub.f32 %v1582_v48, %v564_v51 }
 0x3fd   :  { %1205 = vpow2.f32 %v617_v30 }
 0x3fe   :  { %v1645_v37 = vpop.eup %1197  ;;  %v621_v36 = vmul.f32 1.442695, %v600_v56 }
 0x3ff   :  { %v567_v57 = vpop.xlane.xlu1 %566  ;;  %659 = vrot.lane.b32.xlu1 %v1645_v37, %s1389_s16  ;;  %v792_v41 = vmul.f32 %v1645_v37, %v1637_v33 }
 0x400   :  { %1207 = vpow2.f32 %v621_v36  ;;  %v601_v43 = vsub.f32 %v1587_v52, %v567_v57 }
 0x402   :  { %v1650_v58 = vpop.eup %1199  ;;  %v623_v42 = vmul.f32 1.442695, %v601_v43 }
 0x403   :  { %v1652_v59 = vpop.eup %1201  ;;  %661 = vrot.lane.b32.xlu1 %v1650_v58, %s1389_s16  ;;  %v570_v48 = vpop.xlane.xlu0 %569 }
 0x404   :  { %1209 = vpow2.f32 %v623_v42  ;;  %663 = vrot.lane.b32.xlu0 %v1652_v59, %s1389_s16  ;;  %v602_v60 = vsub.f32 %v1594_v61, %v570_v48  ;;  %v794_v39 = vmul.f32 %v1652_v59, %v1637_v33 }
 0x406   :  { %v1659_v62 = vpop.eup %1203  ;;  %v625_v63 = vmul.f32 1.442695, %v602_v60 }
 0x407   :  { %v1206_v0 = vpop.eup %1205  ;;  %v573_v52 = vpop.xlane.xlu1 %572  ;;  %v796_v44 = vmul.f32 %v1659_v62, %v1637_v33 }
 0x408   :  { %1211 = vpow2.f32 %v625_v63  ;;  %v603_v2 = vsub.f32 %v1598_v1, %v573_v52  ;;  %667 = vrot.lane.b32.xlu0 %v1659_v62, %s1389_s16  ;;  %665 = vrot.lane.b32.xlu1 %v1206_v0, %s1389_s16  ;;  %v795_v40 = vmul.f32 %v1206_v0, %v1637_v33 }
 0x40a   :  { %v1208_v3 = vpop.eup %1207  ;;  %v627_v4 = vmul.f32 1.442695, %v603_v2 }
 0x40b   :  { %v576_v5 = vpop.xlane.xlu0 %575  ;;  %v797_v45 = vmul.f32 %v1208_v3, %v1637_v33 }
 0x40c   :  { %1213 = vpow2.f32 %v627_v4  ;;  %669 = vrot.lane.b32.xlu1 %v1208_v3, %s1389_s16  ;;  %v604_v61 = vsub.f32 %v1602_v55, %v576_v5 }
 0x40e   :  { %v1210_v6 = vpop.eup %1209  ;;  %v629_v7 = vmul.f32 1.442695, %v604_v61 }
 0x40f   :  { %v579_v9 = vpop.xlane.xlu1 %578  ;;  %671 = vrot.lane.b32.xlu0 %v1210_v6, %s1389_s16  ;;  %v582_v10 = vpop.xlane.xlu0 %581  ;;  %v798_v46 = vmul.f32 %v1210_v6, %v1637_v33 }
 0x410   :  { %1215 = vpow2.f32 %v629_v7  ;;  %v605_v1 = vsub.f32 %v1609_v13, %v579_v9  ;;  %v606_v11 = vsub.f32 %v1604_v8, %v582_v10 }
 0x412   :  { %v1212_v12 = vpop.eup %1211  ;;  %v631_v14 = vmul.f32 1.442695, %v605_v1  ;;  %v633_v15 = vmul.f32 1.442695, %v606_v11 }
 0x413   :  { %v585_v16 = vpop.xlane.xlu1 %584  ;;  %673 = vrot.lane.b32.xlu1 %v1212_v12, %s1389_s16  ;;  %v588_v17 = vpop.xlane.xlu0 %587  ;;  %v799_v47 = vmul.f32 %v1212_v12, %v1637_v33 }
 0x414   :  { %1217 = vpow2.f32 %v631_v14  ;;  %v607_v55 = vsub.f32 %v1619_v25, %v585_v16  ;;  %v608_v19 = vsub.f32 %v1616_v24, %v588_v17 }
 0x415   :  { %1219 = vpow2.f32 %v633_v15 }
 0x416   :  { %v1214_v26 = vpop.eup %1213  ;;  %v635_v18 = vmul.f32 1.442695, %v607_v55  ;;  %v637_v27 = vmul.f32 1.442695, %v608_v19 }
 0x417   :  { %v591_v28 = vpop.xlane.xlu1 %590  ;;  %675 = vrot.lane.b32.xlu0 %v1214_v26, %s1389_s16  ;;  %v594_v8 = vpop.xlane.xlu0 %593  ;;  %v800_v49 = vmul.f32 %v1214_v26, %v1635_v32 }
 0x418   :  { %1221 = vpow2.f32 %v635_v18  ;;  %v609_v13 = vsub.f32 %v1629_v21, %v591_v28  ;;  %v610_v20 = vsub.f32 %v1626_v29, %v594_v8  ;;  %v793_v29 = vmul.f32 %v1650_v58, %v1637_v33 }
 0x419   :  { %1223 = vpow2.f32 %v637_v27 }
 0x41a   :  { %v1216_v31 = vpop.eup %1215  ;;  %v639_v34 = vmul.f32 1.442695, %v609_v13  ;;  %v641_v24 = vmul.f32 1.442695, %v610_v20 }
 0x41b   :  { %677 = vrot.lane.b32.xlu1 %v1216_v31, %s1389_s16  ;;  %v801_v50 = vmul.f32 %v1216_v31, %v1635_v32 }
 0x41c   :  { %1225 = vpow2.f32 %v639_v34 }
 0x41d   :  { %1227 = vpow2.f32 %v641_v24 }
 0x41e   :  { %v1218_v25 = vpop.eup %1217 }
 0x41f   :  { %v1220_v23 = vpop.eup %1219  ;;  %679 = vrot.lane.b32.xlu0 %v1218_v25, %s1389_s16  ;;  %v802_v30 = vmul.f32 %v1218_v25, %v1635_v32 }
 0x420   :  { %681 = vrot.lane.b32.xlu1 %v1220_v23, %s1389_s16  ;;  %v803_v51 = vmul.f32 %v1220_v23, %v1635_v32 }
 0x422   :  { %v1222_v35 = vpop.eup %1221 }
 0x423   :  { %v1224_v38 = vpop.eup %1223  ;;  %683 = vrot.lane.b32.xlu0 %v1222_v35, %s1389_s16  ;;  %v804_v33 = vmul.f32 %v1222_v35, %v1635_v32 }
 0x424   :  { %685 = vrot.lane.b32.xlu1 %v1224_v38, %s1389_s16  ;;  %v805_v56 = vmul.f32 %v1224_v38, %v1635_v32 }
 0x426   :  { %v1226_v21 = vpop.eup %1225 }
 0x427   :  { %826 = vrot.lane.b32.xlu0 %v793_v29, %s1389_s16  ;;  %v1228_v22 = vpop.eup %1227  ;;  %v806_v37 = vmul.f32 %v1226_v21, %v1635_v32 }
 0x428   :  { %687 = vrot.lane.b32.xlu1 %v1226_v21, %s1389_s16  ;;  %v807_v36 = vmul.f32 %v1228_v22, %v1635_v32 }
 0x42b   :  { %828 = vrot.lane.b32.xlu0 %v794_v39, %s1389_s16 }
 0x42c   :  { %689 = vrot.lane.b32.xlu1 %v1228_v22, %s1389_s16 }
 0x42f   :  { %830 = vrot.lane.b32.xlu0 %v795_v40, %s1389_s16 }
 0x430   :  { %824 = vrot.lane.b32.xlu1 %v792_v41, %s1389_s16 }
 0x433   :  { %832 = vrot.lane.b32.xlu0 %v796_v44, %s1389_s16 }
 0x434   :  { %834 = vrot.lane.b32.xlu1 %v797_v45, %s1389_s16 }
 0x437   :  { %836 = vrot.lane.b32.xlu0 %v798_v46, %s1389_s16 }
 0x438   :  { %838 = vrot.lane.b32.xlu1 %v799_v47, %s1389_s16 }
 0x43b   :  { %840 = vrot.lane.b32.xlu0 %v800_v49, %s1389_s16 }
 0x43c   :  { %842 = vrot.lane.b32.xlu1 %v801_v50, %s1389_s16 }
 0x43f   :  { %844 = vrot.lane.b32.xlu0 %v802_v30, %s1389_s16 }
 0x440   :  { %846 = vrot.lane.b32.xlu1 %v803_v51, %s1389_s16 }
 0x443   :  { %848 = vrot.lane.b32.xlu0 %v804_v33, %s1389_s16 }
 0x444   :  { %850 = vrot.lane.b32.xlu1 %v805_v56, %s1389_s16 }
 0x447   :  { %852 = vrot.lane.b32.xlu0 %v806_v37, %s1389_s16 }
 0x448   :  { %854 = vrot.lane.b32.xlu1 %v807_v36, %s1389_s16 }
 0x471   :  { %v660_v57 = vpop.permute.xlu1 %659 }
 0x472   :  { %v707_v43 = vsel %vm295_vm4, %v660_v57, 0.0 }
 0x473   :  { %708 = vadd.xlane.f32.xlu0 %v707_v43 }
 0x475   :  { %v662_v58 = vpop.permute.xlu1 %661 }
 0x476   :  { %v664_v42 = vpop.permute.xlu0 %663  ;;  %v710_v59 = vsel %vm295_vm4, %v662_v58, 0.0 }
 0x477   :  { %711 = vadd.xlane.f32.xlu1 %v710_v59  ;;  %v713_v48 = vsel %vm295_vm4, %v664_v42, 0.0 }
 0x478   :  { %714 = vadd.xlane.f32.xlu0 %v713_v48 }
 0x47a   :  { %v666_v60 = vpop.permute.xlu1 %665  ;;  %v668_v62 = vpop.permute.xlu0 %667 }
 0x47b   :  { %v716_v32 = vsel %vm295_vm4, %v666_v60, 0.0  ;;  %v719_v63 = vsel %vm295_vm4, %v668_v62, 0.0 }
 0x47c   :  { %717 = vadd.xlane.f32.xlu0 %v716_v32  ;;  %720 = vadd.xlane.f32.xlu1 %v719_v63 }
 0x47e   :  { %v670_v0 = vpop.permute.xlu1 %669 }
 0x47f   :  { %v722_v52 = vsel %vm295_vm4, %v670_v0, 0.0 }
 0x480   :  { %723 = vadd.xlane.f32.xlu0 %v722_v52 }
 0x481   :  { %v672_v2 = vpop.permute.xlu0 %671 }
 0x482   :  { %v725_v3 = vsel %vm295_vm4, %v672_v2, 0.0 }
 0x483   :  { %726 = vadd.xlane.f32.xlu1 %v725_v3 }
 0x485   :  { %v674_v4 = vpop.permute.xlu1 %673 }
 0x486   :  { %v728_v5 = vsel %vm295_vm4, %v674_v4, 0.0 }
 0x487   :  { %729 = vadd.xlane.f32.xlu0 %v728_v5 }
 0x489   :  { %v676_v61 = vpop.permute.xlu0 %675 }
 0x48a   :  { %v731_v6 = vsel %vm295_vm4, %v676_v61, 0.0  ;;  %v1758_v61 = vand.u32 127, %v285_v53 }
 0x48b   :  { %732 = vadd.xlane.f32.xlu1 %v731_v6 }
 0x48d   :  { %v678_v7 = vpop.permute.xlu1 %677 }
 0x48e   :  { %v734_v9 = vsel %vm295_vm4, %v678_v7, 0.0  ;;  %v1761_v7 = vadd.s32 4294967288, %v1758_v61 }
 0x48f   :  { %735 = vadd.xlane.f32.xlu0 %v734_v9 }
 0x491   :  { %v680_v10 = vpop.permute.xlu0 %679 }
 0x492   :  { %v682_v1 = vpop.permute.xlu1 %681  ;;  %v737_v11 = vsel %vm295_vm4, %v680_v10, 0.0  ;;  %v1766_v10 = vadd.s32 4294967280, %v1758_v61 }
 0x493   :  { %v740_v12 = vsel %vm295_vm4, %v682_v1, 0.0  ;;  %738 = vadd.xlane.f32.xlu1 %v737_v11  ;;  %v1769_v1 = vadd.s32 4294967272, %v1758_v61 }
 0x494   :  { %741 = vadd.xlane.f32.xlu0 %v740_v12 }
 0x495   :  { %v684_v14 = vpop.permute.xlu0 %683 }
 0x496   :  { %v686_v15 = vpop.permute.xlu1 %685  ;;  %v743_v16 = vsel %vm295_vm4, %v684_v14, 0.0 }
 0x497   :  { %v746_v17 = vsel %vm295_vm4, %v686_v15, 0.0  ;;  %744 = vadd.xlane.f32.xlu1 %v743_v16  ;;  %v1772_v15 = vadd.s32 4294967264, %v1758_v61  ;;  %v1775_v16 = vadd.s32 4294967256, %v1758_v61 }
 0x498   :  { %747 = vadd.xlane.f32.xlu0 %v746_v17  ;;  %v1778_v17 = vadd.s32 4294967248, %v1758_v61 }
 0x499   :  { %v827_v55 = vpop.permute.xlu0 %826 }
 0x49a   :  { %v688_v19 = vpop.permute.xlu1 %687  ;;  %v875_v26 = vsel %vm295_vm4, %v827_v55, 0.0  ;;  %v1025_v55 = vsub.s32 %v1761_v7, %v1530_v54 }
 0x49b   :  { %v749_v18 = vsel %vm295_vm4, %v688_v19, 0.0  ;;  %876 = vadd.xlane.f32.xlu1 %v875_v26  ;;  %v1032_v19 = vsub.s32 %v1766_v10, %v1530_v54 }
 0x49c   :  { %750 = vadd.xlane.f32.xlu0 %v749_v18 }
 0x49d   :  { %v829_v27 = vpop.permute.xlu0 %828 }
 0x49e   :  { %v690_v28 = vpop.permute.xlu1 %689  ;;  %v878_v8 = vsel %vm295_vm4, %v829_v27, 0.0  ;;  %v1787_v27 = vadd.s32 4294967240, %v1758_v61 }
 0x49f   :  { %v752_v13 = vsel %vm295_vm4, %v690_v28, 0.0  ;;  %879 = vadd.xlane.f32.xlu1 %v878_v8  ;;  %v1039_v28 = vsub.s32 %v1769_v1, %v1530_v54  ;;  %v1020_v8 = vsub.s32 %v1758_v61, %v1530_v54 }
 0x4a0   :  { %753 = vadd.xlane.f32.xlu0 %v752_v13  ;;  %v1794_v13 = vadd.s32 4294967232, %v1758_v61 }
 0x4a1   :  { %v831_v20 = vpop.permute.xlu0 %830 }
 0x4a2   :  { %v825_v31 = vpop.permute.xlu1 %824  ;;  %v881_v34 = vsel %vm295_vm4, %v831_v20, 0.0  ;;  %v1797_v20 = vadd.s32 4294967224, %v1758_v61 }
 0x4a3   :  { %v872_v24 = vsel %vm295_vm4, %v825_v31, 0.0  ;;  %882 = vadd.xlane.f32.xlu1 %v881_v34 }
 0x4a4   :  { %873 = vadd.xlane.f32.xlu0 %v872_v24 }
 0x4a5   :  { %v833_v25 = vpop.permute.xlu0 %832 }
 0x4a6   :  { %v835_v23 = vpop.permute.xlu1 %834  ;;  %v884_v35 = vsel %vm295_vm4, %v833_v25, 0.0  ;;  %v1046_v25 = vsub.s32 %v1772_v15, %v1530_v54 }
 0x4a7   :  { %v887_v38 = vsel %vm295_vm4, %v835_v23, 0.0  ;;  %885 = vadd.xlane.f32.xlu1 %v884_v35  ;;  %v1053_v23 = vsub.s32 %v1775_v16, %v1530_v54  ;;  %v1060_v35 = vsub.s32 %v1778_v17, %v1530_v54  ;;  %v1099_v17 = vadd.s32 4294967200, %v1758_v61 }
 0x4a8   :  { %888 = vadd.xlane.f32.xlu0 %v887_v38 }
 0x4a9   :  { %v837_v29 = vpop.permute.xlu0 %836 }
 0x4aa   :  { %v839_v21 = vpop.permute.xlu1 %838  ;;  %v890_v39 = vsel %vm295_vm4, %v837_v29, 0.0 }
 0x4ab   :  { %v893_v22 = vsel %vm295_vm4, %v839_v21, 0.0  ;;  %891 = vadd.xlane.f32.xlu1 %v890_v39 }
 0x4ac   :  { %894 = vadd.xlane.f32.xlu0 %v893_v22  ;;  %v1067_v22 = vsub.s32 %v1787_v27, %v1530_v54 }
 0x4ad   :  { %v841_v40 = vpop.permute.xlu0 %840 }
 0x4ae   :  { %v843_v41 = vpop.permute.xlu1 %842  ;;  %v896_v44 = vsel %vm295_vm4, %v841_v40, 0.0 }
 0x4af   :  { %v899_v45 = vsel %vm295_vm4, %v843_v41, 0.0  ;;  %897 = vadd.xlane.f32.xlu1 %v896_v44  ;;  %v1074_v41 = vsub.s32 %v1794_v13, %v1530_v54 }
 0x4b0   :  { %900 = vadd.xlane.f32.xlu0 %v899_v45  ;;  %v1081_v45 = vsub.s32 %v1797_v20, %v1530_v54 }
 0x4b1   :  { %v845_v46 = vpop.permute.xlu0 %844 }
 0x4b2   :  { %v847_v47 = vpop.permute.xlu1 %846  ;;  %v902_v49 = vsel %vm295_vm4, %v845_v46, 0.0 }
 0x4b3   :  { %v905_v50 = vsel %vm295_vm4, %v847_v47, 0.0  ;;  %903 = vadd.xlane.f32.xlu1 %v902_v49 }
 0x4b4   :  { %906 = vadd.xlane.f32.xlu0 %v905_v50 }
 0x4b5   :  { %v849_v30 = vpop.permute.xlu0 %848 }
 0x4b6   :  { %v851_v51 = vpop.permute.xlu1 %850  ;;  %v908_v33 = vsel %vm295_vm4, %v849_v30, 0.0 }
 0x4b7   :  { %v911_v56 = vsel %vm295_vm4, %v851_v51, 0.0  ;;  %909 = vadd.xlane.f32.xlu1 %v908_v33 }
 0x4b8   :  { %912 = vadd.xlane.f32.xlu0 %v911_v56 }
 0x4b9   :  { %v853_v37 = vpop.permute.xlu0 %852 }
 0x4ba   :  { %v855_v36 = vpop.permute.xlu1 %854  ;;  %v914_v57 = vsel %vm295_vm4, %v853_v37, 0.0  ;;  %v1815_v37 = vadd.s32 4294967216, %v1758_v61 }
 0x4bb   :  { %v917_v43 = vsel %vm295_vm4, %v855_v36, 0.0  ;;  %915 = vadd.xlane.f32.xlu1 %v914_v57 }
 0x4bc   :  { %918 = vadd.xlane.f32.xlu0 %v917_v43 }
 0x500   :  { %v709_v58 = vpop.xlane.xlu0 %708 }
 0x504   :  { %v712_v59 = vpop.xlane.xlu1 %711 }
 0x505   :  { %v715_v42 = vpop.xlane.xlu0 %714  ;;  %1229 = vrcp.f32 %v712_v59 }
 0x506   :  { %1231 = vrcp.f32 %v715_v42 }
 0x509   :  { %v718_v48 = vpop.xlane.xlu0 %717  ;;  %v721_v60 = vpop.xlane.xlu1 %720 }
 0x50a   :  { %1233 = vrcp.f32 %v718_v48 }
 0x50b   :  { %1235 = vrcp.f32 %v709_v58 }
 0x50c   :  { %1237 = vrcp.f32 %v721_v60 }
 0x50d   :  { %v724_v62 = vpop.xlane.xlu0 %723 }
 0x50e   :  { %1239 = vrcp.f32 %v724_v62 }
 0x50f   :  { %v1230_v11 = vpop.eup %1229 }
 0x510   :  { %v727_v32 = vpop.xlane.xlu1 %726  ;;  %v1232_v12 = vpop.eup %1231 }
 0x511   :  { %1241 = vrcp.f32 %v727_v32 }
 0x514   :  { %v730_v63 = vpop.xlane.xlu0 %729  ;;  %v1234_v31 = vpop.eup %1233 }
 0x515   :  { %1243 = vrcp.f32 %v730_v63  ;;  %v1236_v38 = vpop.eup %1235 }
 0x516   :  { %v1238_v46 = vpop.eup %1237 }
 0x518   :  { %v733_v0 = vpop.xlane.xlu1 %732  ;;  %v1240_v30 = vpop.eup %1239 }
 0x519   :  { %1245 = vrcp.f32 %v733_v0 }
 0x51b   :  { %v1242_v48 = vpop.eup %1241 }
 0x51c   :  { %v736_v52 = vpop.xlane.xlu0 %735 }
 0x51d   :  { %1247 = vrcp.f32 %v736_v52 }
 0x51f   :  { %v1244_v63 = vpop.eup %1243 }
 0x520   :  { %v739_v2 = vpop.xlane.xlu1 %738 }
 0x521   :  { %v1751_v3 = vpop.xlane.xlu0 %741  ;;  %1249 = vrcp.f32 %v739_v2 }
 0x522   :  { %1251 = vrcp.f32 %v1751_v3 }
 0x524   :  { %v1753_v4 = vpop.xlane.xlu1 %744 }
 0x525   :  { %v1755_v5 = vpop.xlane.xlu0 %747  ;;  %1253 = vrcp.f32 %v1753_v4 }
 0x526   :  { %1255 = vrcp.f32 %v1755_v5 }
 0x528   :  { %v877_v6 = vpop.xlane.xlu1 %876 }
 0x529   :  { %v1763_v9 = vpop.xlane.xlu0 %750  ;;  %v937_v53 = vmul.f32 %v1230_v11, %v877_v6 }
 0x52a   :  { %1257 = vrcp.f32 %v1763_v9 }
 0x52b   :  { %v969_v34 = vmul.f32 0.01, %v937_v53  ;;  %vm953_vm9 = vcmp.ge.f32.partialorder %v937_v53, 0.0 }
 0x52c   :  { %v880_v14 = vpop.xlane.xlu1 %879 }
 0x52d   :  { %v938_v26 = vmul.f32 %v1232_v12, %v880_v14  ;;  %v1784_v18 = vpop.xlane.xlu0 %753  ;;  %v985_v47 = vsel %vm953_vm9, %v937_v53, %v969_v34  ;;  %v1246_v53 = vpop.eup %1245 }
 0x52e   :  { %v1026_v58 = vrot.slane %v985_v47, %v1025_v55  ;;  %v1092_v55 = vadd.s32 4294967208, %v1758_v61  ;;  %1259 = vrcp.f32 %v1784_v18 }
 0x52f   :  { %v970_v29 = vmul.f32 0.01, %v938_v26  ;;  %vm954_vm11 = vcmp.ge.f32.partialorder %v938_v26, 0.0 }
 0x530   :  { %v883_v24 = vpop.xlane.xlu1 %882 }
 0x531   :  { %v939_v21 = vmul.f32 %v1234_v31, %v883_v24  ;;  %v874_v39 = vpop.xlane.xlu0 %873  ;;  %v986_v51 = vsel %vm954_vm11, %v938_v26, %v970_v29 }
 0x532   :  { %v936_v40 = vmul.f32 %v1236_v38, %v874_v39  ;;  %v1033_v60 = vrot.slane %v986_v51, %v1032_v19  ;;  %v1248_v19 = vpop.eup %1247 }
 0x533   :  { %vm955_vm12 = vcmp.ge.f32.partialorder %v939_v21, 0.0  ;;  %v971_v44 = vmul.f32 0.01, %v939_v21  ;;  %v1250_v31 = vpop.eup %1249 }
 0x534   :  { %vm952_vm13 = vcmp.ge.f32.partialorder %v936_v40, 0.0  ;;  %v968_v49 = vmul.f32 0.01, %v936_v40  ;;  %v886_v50 = vpop.xlane.xlu1 %885 }
 0x535   :  { %v940_v33 = vmul.f32 %v1238_v46, %v886_v50  ;;  %v889_v56 = vpop.xlane.xlu0 %888  ;;  %v987_v36 = vsel %vm955_vm12, %v939_v21, %v971_v44  ;;  %v1088_v44 = vsub.s32 %v1815_v37, %v1530_v54 }
 0x536   :  { %v984_v57 = vsel %vm952_vm13, %v936_v40, %v968_v49  ;;  %v941_v43 = vmul.f32 %v1240_v30, %v889_v56  ;;  %v1040_v0 = vrot.slane %v987_v36, %v1039_v28  ;;  %v1106_v49 = vadd.s32 4294967192, %v1758_v61 }
 0x537   :  { %v1021_v42 = vrot.slane %v984_v57, %v1020_v8  ;;  %vm956_vm0 = vcmp.ge.f32.partialorder %v940_v33, 0.0  ;;  %v972_v59 = vmul.f32 0.01, %v940_v33  ;;  %v1095_v30 = vsub.s32 %v1092_v55, %v1530_v54 }
 0x538   :  { %vm957_vm1 = vcmp.ge.f32.partialorder %v941_v43, 0.0  ;;  %v973_v62 = vmul.f32 0.01, %v941_v43  ;;  %v892_v32 = vpop.xlane.xlu1 %891  ;;  %vm1097_vm13 = vcmask 786112  }
 0x539   :  { %v1028_v52 = vsel %vm1027_vm6, %v1026_v58, %v1021_v42  ;;  %v988_v2 = vsel %vm956_vm0, %v940_v33, %v972_v59  ;;  %v942_v3 = vmul.f32 %v1242_v48, %v892_v32  ;;  %v895_v4 = vpop.xlane.xlu0 %894  ;;  %vm1083_vm6 = vcmask 654912  }
 0x53a   :  { %v1035_v6 = vsel %vm1034_vm7, %v1033_v60, %v1028_v52  ;;  %v1047_v7 = vrot.slane %v988_v2, %v1046_v25  ;;  %v989_v10 = vsel %vm957_vm1, %v941_v43, %v973_v62  ;;  %v943_v1 = vmul.f32 %v1244_v63, %v895_v4 }
 0x53b   :  { %v1042_v5 = vsel %vm1041_vm8, %v1040_v0, %v1035_v6  ;;  %v1054_v11 = vrot.slane %v989_v10, %v1053_v23  ;;  %vm958_vm4 = vcmp.ge.f32.partialorder %v942_v3, 0.0  ;;  %v974_v12 = vmul.f32 0.01, %v942_v3  ;;  %v1252_v23 = vpop.eup %1251 }
 0x53c   :  { %v1049_v14 = vsel %vm1048_vm10, %v1047_v7, %v1042_v5  ;;  %vm959_vm5 = vcmp.ge.f32.partialorder %v943_v1, 0.0  ;;  %v975_v15 = vmul.f32 0.01, %v943_v1  ;;  %v898_v16 = vpop.xlane.xlu1 %897  ;;  %vm1090_vm7 = vcmask 720512   ;;  %v1254_v21 = vpop.eup %1253 }
 0x53d   :  { %v990_v26 = vsel %vm958_vm4, %v942_v3, %v974_v12  ;;  %v944_v28 = vmul.f32 %v1246_v53, %v898_v16  ;;  %v901_v8 = vpop.xlane.xlu0 %900  ;;  %v1056_v38 = vsel %vm1055_vm14, %v1054_v11, %v1049_v14  ;;  %v1256_v27 = vpop.eup %1255  ;;  %v1102_v43 = vsub.s32 %v1099_v17, %v1530_v54 }
 0x53e   :  { %v1061_v34 = vrot.slane %v990_v26, %v1060_v35  ;;  %v991_v24 = vsel %vm959_vm5, %v943_v1, %v975_v15  ;;  %v945_v25 = vmul.f32 %v1248_v19, %v901_v8  ;;  %v1109_v42 = vsub.s32 %v1106_v49, %v1530_v54  ;;  %v1258_v32 = vpop.eup %1257 }
 0x53f   :  { %v1068_v9 = vrot.slane %v991_v24, %v1067_v22  ;;  %vm960_vm8 = vcmp.ge.f32.partialorder %v944_v28, 0.0  ;;  %v976_v29 = vmul.f32 0.01, %v944_v28  ;;  %v1113_v48 = vadd.s32 4294967184, %v1758_v61  ;;  %v1260_v2 = vpop.eup %1259 }
 0x540   :  { %v1063_v39 = vsel %vm1062_vm15, %v1061_v34, %v1056_v38  ;;  %vm961_vm9 = vcmp.ge.f32.partialorder %v945_v25, 0.0  ;;  %v977_v18 = vmul.f32 0.01, %v945_v25  ;;  %v904_v40 = vpop.xlane.xlu1 %903  ;;  %vm1104_vm15 = vcmask 851712  }
 0x541   :  { %v992_v35 = vsel %vm960_vm8, %v944_v28, %v976_v29  ;;  %v946_v46 = vmul.f32 %v1250_v31, %v904_v40  ;;  %v907_v47 = vpop.xlane.xlu0 %906  ;;  %v1070_v33 = vsel %vm1069_vm2, %v1068_v9, %v1063_v39  ;;  %v1116_v10 = vsub.s32 %v1113_v48, %v1530_v54 }
 0x542   :  { %v1075_v22 = vrot.slane %v992_v35, %v1074_v41  ;;  %v993_v50 = vsel %vm961_vm9, %v945_v25, %v977_v18  ;;  %v947_v51 = vmul.f32 %v1252_v23, %v907_v47  ;;  %vm1111_vm1 = vcmask 917312  }
 0x543   :  { %v1082_v56 = vrot.slane %v993_v50, %v1081_v45  ;;  %vm962_vm10 = vcmp.ge.f32.partialorder %v946_v46, 0.0  ;;  %v978_v37 = vmul.f32 0.01, %v946_v46  ;;  %v1120_v45 = vadd.s32 4294967176, %v1758_v61 }
 0x544   :  { %v1077_v36 = vsel %vm1076_vm3, %v1075_v22, %v1070_v33  ;;  %vm963_vm11 = vcmp.ge.f32.partialorder %v947_v51, 0.0  ;;  %v979_v57 = vmul.f32 0.01, %v947_v51  ;;  %v910_v13 = vpop.xlane.xlu1 %909  ;;  %vm1118_vm3 = vcmask 982912  }
 0x545   :  { %v994_v41 = vsel %vm962_vm10, %v946_v46, %v978_v37  ;;  %v948_v58 = vmul.f32 %v1254_v21, %v910_v13  ;;  %v913_v59 = vpop.xlane.xlu0 %912  ;;  %v1084_v63 = vsel %vm1083_vm6, %v1082_v56, %v1077_v36  ;;  %v1123_v12 = vsub.s32 %v1120_v45, %v1530_v54 }
 0x546   :  { %v1089_v60 = vrot.slane %v994_v41, %v1088_v44  ;;  %v995_v62 = vsel %vm963_vm11, %v947_v51, %v979_v57  ;;  %v949_v20 = vmul.f32 %v1256_v27, %v913_v59  ;;  %vm1125_vm4 = vcmask 1048512  }
 0x547   :  { %v1096_v0 = vrot.slane %v995_v62, %v1095_v30  ;;  %vm964_vm12 = vcmp.ge.f32.partialorder %v948_v58, 0.0  ;;  %v980_v52 = vmul.f32 0.01, %v948_v58 }
 0x548   :  { %v1091_v3 = vsel %vm1090_vm7, %v1089_v60, %v1084_v63  ;;  %vm965_vm14 = vcmp.ge.f32.partialorder %v949_v20, 0.0  ;;  %v981_v4 = vmul.f32 0.01, %v949_v20  ;;  %v916_v6 = vpop.xlane.xlu1 %915 }
 0x549   :  { %v996_v7 = vsel %vm964_vm12, %v948_v58, %v980_v52  ;;  %v950_v1 = vmul.f32 %v1258_v32, %v916_v6  ;;  %v919_v5 = vpop.xlane.xlu0 %918  ;;  %v1098_v14 = vsel %vm1097_vm13, %v1096_v0, %v1091_v3 }
 0x54a   :  { %v1103_v61 = vrot.slane %v996_v7, %v1102_v43  ;;  %v997_v11 = vsel %vm965_vm14, %v949_v20, %v981_v4  ;;  %v951_v53 = vmul.f32 %v1260_v2, %v919_v5 }
 0x54b   :  { %v1110_v15 = vrot.slane %v997_v11, %v1109_v42  ;;  %vm966_vm0 = vcmp.ge.f32.partialorder %v950_v1, 0.0  ;;  %v982_v16 = vmul.f32 0.01, %v950_v1 }
 0x54c   :  { %v1105_v55 = vsel %vm1104_vm15, %v1103_v61, %v1098_v14  ;;  %vm967_vm2 = vcmp.ge.f32.partialorder %v951_v53, 0.0  ;;  %v983_v19 = vmul.f32 0.01, %v951_v53 }
 0x54d   :  { %v998_v26 = vsel %vm966_vm0, %v950_v1, %v982_v16  ;;  %v1112_v31 = vsel %vm1111_vm1, %v1110_v15, %v1105_v55 }
 0x54e   :  { %v1117_v28 = vrot.slane %v998_v26, %v1116_v10  ;;  %v999_v8 = vsel %vm967_vm2, %v951_v53, %v983_v19 }
 0x54f   :  { %v1124_v34 = vrot.slane %v999_v8, %v1123_v12 }
 0x550   :  { %v1119_v24 = vsel %vm1118_vm3, %v1117_v28, %v1112_v31 }
 0x551   :  { %v1126_v25 = vsel %vm1125_vm4, %v1124_v34, %v1119_v24 }
 0x552   :  { %1128 = vst [vmem:[%s1867_s8] sm:$0x1] %v1126_v25 }
 0x553   :  { %1133 = vsyncpa [#allocation3], 1 }
 0x554   :  { %1134 = vsyncpa [#allocation5], 1 }
 0x555   :  { %1135 = vsyncpa [#allocation8], 1 }

</bundles_post_ra>
